<compile_context>
chip_gen: v6e
topology: v6e:2x2x1
jax: 0.10.0
libtpu: 0.0.40
codegen_flags: <defaults>
</compile_context>

<pallas_src>
import functools
import math

import jax
import jax.numpy as jnp
from jax.experimental import pallas as pl
from jax.experimental.pallas import tpu as pltpu

TOL = 1e-6            # the module references a global TOL; standard epsilon clamp
BETA = 0.5            # CorrectionLoss(beta=0.5)
_LOG_2PI = math.log(2.0 * math.pi)

_MAX_TILE_ELEMS = 1 << 20              # ~4 MiB f32 (2 MiB bf16) per input tile
_VMEM_LIMIT_BYTES = 48 * 1024 * 1024   # buffers + elementwise temporaries; < v7x 64 MiB physical


def _round_up(x, m):
    return ((x + m - 1) // m) * m


def _num_splits():
    """2 on 2-TensorCore chips (v7x); 1 on single-TC chips (v5e / v6e)."""
    try:
        kind = jax.devices()[0].device_kind.lower()
    except Exception:
        return 1
    return 2 if ("v7" in kind or "tpu7" in kind) else 1


def _correction_loss_kernel(recon_y_ref, y_ref, z_hat_ref, z_dec_mu_ref,
                            zh_mu_ref, zh_logvar_ref, z_mu_ref, z_logvar_ref,
                            out_ref, acc_ref, *,
                            n_img, n_z, n_zk, beta,
                            rows, tile_rows, lanes, tiles_per_split, needs_mask):
    p = pl.program_id(0)            # core split (CORE_PARALLEL on v7x; size 1 elsewhere)
    t = pl.program_id(1)            # reduction over row tiles

    @pl.when(t == 0)
    def _init():
        acc_ref[...] = jnp.zeros_like(acc_ref)

    # ---- per-tile BCE (torch.nn.BCELoss(mean) with torch's -100 log clamp) ----
    x = recon_y_ref[...].astype(jnp.float32)                 # predicted probabilities
    y = jnp.maximum(y_ref[...].astype(jnp.float32), TOL)     # torch.clamp(y_hat, min=TOL)
    log_x = jnp.maximum(jnp.log(x), -100.0)
    log_1mx = jnp.maximum(jnp.log(1.0 - x), -100.0)
    bce = -(log_1mx + y * (log_x - log_1mx))                 # == -(y*log x + (1-y)*log(1-x))

    if needs_mask:
        # Ragged tail: row indices >= `rows` are tile overrun (undefined data) -> zero them.
        g = p * tiles_per_split + t                          # unclamped global tile index
        row_ids = g * tile_rows + jax.lax.broadcasted_iota(
            jnp.int32, (tile_rows, lanes), 0)
        bce = jnp.where(row_ids < rows, bce, 0.0)

    # vreg-aligned partial sums into a small (8, lanes) f32 accumulator (pure VALU)
    acc_ref[...] += bce.reshape(tile_rows // 8, 8, lanes).sum(axis=0)

    @pl.when(t == tiles_per_split - 1)
    def _finalize():
        # one cross-lane reduce per split; mean uses the GLOBAL element count
        partial_recon = jnp.sum(acc_ref[...]) * (1.0 / n_img)

        # ---- tiny latent terms (B, Dz); evaluated once per split, added only on split 0 ----
        z_hat = z_hat_ref[...].astype(jnp.float32)
        d = z_hat - z_dec_mu_ref[...].astype(jnp.float32)
        mu = zh_mu_ref[...].astype(jnp.float32)
        logvar = zh_logvar_ref[...].astype(jnp.float32)
        inv_std = jnp.exp(-0.5 * logvar)                     # 1 / exp(logvar / 2)
        neg_logp_std = 0.5 * d * d + 0.5 * _LOG_2PI          # -N(0,1).log_prob(z_hat - z_dec_mu)
        logp_enc = (-0.5 * ((z_hat - mu) * inv_std) ** 2
                    - 0.5 * logvar - 0.5 * _LOG_2PI)         # N(mu, std).log_prob(z_hat)
        z_hat_kl_div = jnp.sum(neg_logp_std + logp_enc) * (1.0 / n_z)

        z_mu = z_mu_ref[...].astype(jnp.float32)
        z_logvar = z_logvar_ref[...].astype(jnp.float32)
        kl_terms = 1.0 + z_logvar - z_mu * z_mu - jnp.exp(z_logvar)
        z_kl_div = -0.5 * (jnp.sum(kl_terms) * (1.0 / n_zk))

        extra = beta * (z_hat_kl_div + z_kl_div)
        total = partial_recon + jnp.where(p == 0, extra, 0.0)
        out_ref[...] = jnp.full(out_ref.shape, total, dtype=jnp.float32)


def _plan_layout(n_img):
    """Choose lanes in {1024..128} so rows is a multiple of 8; pad only if n_img % 1024 != 0."""
    padded = n_img if n_img % 1024 == 0 else _round_up(n_img, 1024)
    for lanes in (1024, 512, 256, 128):
        if padded % (8 * lanes) == 0:
            return padded, lanes, padded // lanes
    raise AssertionError("unreachable: padded length is a multiple of 1024")


def _as_rows(x, padded, rows, lanes):
    """Flatten (free); pad (rare) with the BCE-neutral value 1; reshape lane-dense."""
    flat = x.reshape(-1)
    pad = padded - flat.shape[0]
    if pad:
        # x = 1, y = 1 -> bce = -(max(log 0,-100) + 1*(0 - max(log 0,-100))) == 0 exactly
        flat = jnp.concatenate([flat, jnp.full((pad,), 1.0, flat.dtype)])
    return flat.reshape(rows, lanes)


def correction_loss(recon_y_hat, y_hat, z_hat, z_dec_mu,
                    zh_mu, zh_logvar, z_mu, z_logvar, *,
                    beta=BETA, max_tile_elems=_MAX_TILE_ELEMS):
    """recon_y_hat / y_hat: any shape / float dtype; z-tensors: (B, Dz)."""
    # GLOBAL element counts for the three means (never per-block sizes)
    n_img = int(math.prod(recon_y_hat.shape))
    n_z = int(math.prod(z_hat.shape))
    n_zk = int(math.prod(z_mu.shape))

    padded, lanes, rows = _plan_layout(n_img)
    # Keep native dtype (bf16 ingress halves HBM bytes); upcast on-vreg in the kernel.
    ry = _as_rows(recon_y_hat, padded, rows, lanes)
    yt = _as_rows(y_hat, padded, rows, lanes)

    tile_rows = min(rows, max(8, (max_tile_elems // lanes) // 8 * 8))
    n_tiles = pl.cdiv(rows, tile_rows)

    n_splits = _num_splits()
    if n_tiles < 2:
        n_splits = 1
    tiles_per_split = pl.cdiv(n_tiles, n_splits)
    has_overflow = n_splits * tiles_per_split != n_tiles
    needs_mask = (rows % tile_rows != 0) or has_overflow

    def img_index(p, t):
        g = p * tiles_per_split + t
        if has_overflow:                    # keep the DMA in-bounds; kernel masks it to zero
            g = jnp.minimum(g, n_tiles - 1)
        return (g, 0)

    img_spec = pl.BlockSpec((tile_rows, lanes), img_index)

    def small_spec(shape):
        return pl.BlockSpec(shape, lambda p, t: (0, 0))       # resident, copied once

    kernel = functools.partial(
        _correction_loss_kernel,
        n_img=float(n_img), n_z=float(n_z), n_zk=float(n_zk), beta=float(beta),
        rows=rows, tile_rows=tile_rows, lanes=lanes,
        tiles_per_split=tiles_per_split, needs_mask=needs_mask)

    if n_splits > 1:
        split_sem = getattr(pltpu, "CORE_PARALLEL", "parallel")   # land on both TCs (v7x)
    else:
        split_sem = "arbitrary"

    out = pl.pallas_call(
        kernel,
        out_shape=jax.ShapeDtypeStruct((n_splits, 8, 128), jnp.float32),
        grid=(n_splits, tiles_per_split),
        in_specs=[img_spec, img_spec,
                  small_spec(z_hat.shape), small_spec(z_dec_mu.shape),
                  small_spec(zh_mu.shape), small_spec(zh_logvar.shape),
                  small_spec(z_mu.shape), small_spec(z_logvar.shape)],
        out_specs=pl.BlockSpec((1, 8, 128), lambda p, t: (p, 0, 0)),
        scratch_shapes=[pltpu.VMEM((8, lanes), jnp.float32)],
        compiler_params=pltpu.CompilerParams(
            dimension_semantics=(split_sem, "arbitrary"),
            vmem_limit_bytes=_VMEM_LIMIT_BYTES),
    )(ry, yt, z_hat, z_dec_mu, zh_mu, zh_logvar, z_mu, z_logvar)

    # one partial scalar per split / TensorCore; trivial combine in the wrapper
    return jnp.sum(out[:, 0, 0])


def _reference(recon_y_hat, y_hat, z_hat, z_dec_mu, zh_mu, zh_logvar, z_mu, z_logvar):
    y = jnp.maximum(y_hat, TOL)
    x = recon_y_hat
    bce = -(y * jnp.maximum(jnp.log(x), -100.0)
            + (1.0 - y) * jnp.maximum(jnp.log(1.0 - x), -100.0))
    recon_loss = jnp.mean(bce)
    std = jnp.exp(zh_logvar / 2.0)
    d = z_hat - z_dec_mu
    neg_logp_std = 0.5 * d * d + 0.5 * _LOG_2PI
    logp_enc = -0.5 * ((z_hat - zh_mu) / std) ** 2 - jnp.log(std) - 0.5 * _LOG_2PI
    z_hat_kl = jnp.mean(neg_logp_std + logp_enc)
    z_kl = -0.5 * jnp.mean(1.0 + z_logvar - z_mu ** 2 - jnp.exp(z_logvar))
    return recon_loss + BETA * (z_hat_kl + z_kl)


if __name__ == "__main__":
    key = jax.random.PRNGKey(0)
    ks = jax.random.split(key, 8)

    B, C, H, W = 2, 4, 16, 16       # image-like reconstruction target (NCHW)
    DZ = 32                         # latent dim

    recon_y_hat = jax.nn.sigmoid(jax.random.normal(ks[0], (B, C, H, W), jnp.float32))
    y_hat = jax.nn.sigmoid(jax.random.normal(ks[1], (B, C, H, W), jnp.float32))
    z_hat = jax.random.normal(ks[2], (B, DZ), jnp.float32)
    z_dec_mu = jax.random.normal(ks[3], (B, DZ), jnp.float32)
    zh_mu = jax.random.normal(ks[4], (B, DZ), jnp.float32)
    zh_logvar = 0.1 * jax.random.normal(ks[5], (B, DZ), jnp.float32)
    z_mu = jax.random.normal(ks[6], (B, DZ), jnp.float32)
    z_logvar = 0.1 * jax.random.normal(ks[7], (B, DZ), jnp.float32)

    # primary test: n_img divisible by 1024 -> zero-copy reshape-only path
    loss = correction_loss(recon_y_hat, y_hat, z_hat, z_dec_mu,
                           zh_mu, zh_logvar, z_mu, z_logvar)
    loss = jax.block_until_ready(loss)
    ref = _reference(recon_y_hat, y_hat, z_hat, z_dec_mu,
                     zh_mu, zh_logvar, z_mu, z_logvar)
    assert jnp.allclose(loss, ref, rtol=1e-5, atol=1e-5), (loss, ref)

    # secondary test: ragged n_img (pad fallback) + small tile cap so the in-kernel
    # tail-row masking path and multi-tile accumulation are exercised.
    ks2 = jax.random.split(jax.random.PRNGKey(0), 2)
    ry2 = jax.nn.sigmoid(jax.random.normal(ks2[0], (2, 3, 40, 40), jnp.float32))
    yh2 = jax.nn.sigmoid(jax.random.normal(ks2[1], (2, 3, 40, 40), jnp.float32))
    loss2 = correction_loss(ry2, yh2, z_hat, z_dec_mu,
                            zh_mu, zh_logvar, z_mu, z_logvar,
                            max_tile_elems=16 * 256)
    loss2 = jax.block_until_ready(loss2)
    ref2 = _reference(ry2, yh2, z_hat, z_dec_mu, zh_mu, zh_logvar, z_mu, z_logvar)
    assert jnp.allclose(loss2, ref2, rtol=1e-5, atol=1e-5), (loss2, ref2)

    print("KERNEL_OK")
</pallas_src>

<mosaic_0001>
module attributes {stable_mosaic.version = 11 : i64} {
  func.func @_correction_loss_kernel(%arg0: i32, %arg1: i32, %arg2: memref<8x256xf32, #tpu.memory_space<vmem>>, %arg3: memref<8x256xf32, #tpu.memory_space<vmem>>, %arg4: memref<2x32xf32, #tpu.memory_space<vmem>>, %arg5: memref<2x32xf32, #tpu.memory_space<vmem>>, %arg6: memref<2x32xf32, #tpu.memory_space<vmem>>, %arg7: memref<2x32xf32, #tpu.memory_space<vmem>>, %arg8: memref<2x32xf32, #tpu.memory_space<vmem>>, %arg9: memref<2x32xf32, #tpu.memory_space<vmem>>, %arg10: memref<1x8x128xf32, #tpu.memory_space<vmem>>, %arg11: memref<8x256xf32, #tpu.memory_space<vmem>>) attributes {dimension_semantics = [#tpu.dimension_semantics<arbitrary>, #tpu.dimension_semantics<arbitrary>], iteration_bounds = array<i64: 1, 1>, scalar_prefetch = 0 : i64, scratch_operands = 1 : i64, tpu.core_type = #tpu.core_type<tc>, window_params = [{transform_indices = @transform_0, window_bounds = array<i64: 8, 256>}, {transform_indices = @transform_1, window_bounds = array<i64: 8, 256>}, {pipeline_mode = #tpu.pipeline_mode<synchronous>, transform_indices = @transform_2, window_bounds = array<i64: 2, 32>}, {pipeline_mode = #tpu.pipeline_mode<synchronous>, transform_indices = @transform_3, window_bounds = array<i64: 2, 32>}, {pipeline_mode = #tpu.pipeline_mode<synchronous>, transform_indices = @transform_4, window_bounds = array<i64: 2, 32>}, {pipeline_mode = #tpu.pipeline_mode<synchronous>, transform_indices = @transform_5, window_bounds = array<i64: 2, 32>}, {pipeline_mode = #tpu.pipeline_mode<synchronous>, transform_indices = @transform_6, window_bounds = array<i64: 2, 32>}, {pipeline_mode = #tpu.pipeline_mode<synchronous>, transform_indices = @transform_7, window_bounds = array<i64: 2, 32>}, {transform_indices = @transform_8, window_bounds = array<i64: 1, 8, 128>}]} {
    %c0_i32 = arith.constant 0 : i32
    %0 = arith.cmpi eq, %arg1, %c0_i32 : i32
    %1 = arith.extui %0 : i1 to i32
    %c0_i32_0 = arith.constant 0 : i32
    %2 = arith.cmpi ne, %1, %c0_i32_0 : i32
    scf.if %2 {
      %cst_15 = arith.constant 0.000000e+00 : f32
      %28 = vector.broadcast %cst_15 : f32 to vector<8x256xf32>
      %c0_16 = arith.constant 0 : index
      %c0_17 = arith.constant 0 : index
      %29 = vector.load %arg11[%c0_16, %c0_17] : memref<8x256xf32, #tpu.memory_space<vmem>>, vector<8x256xf32>
      tpu.vector_store %arg11[%c0_16, %c0_17], %28 {strides = array<i32>} : memref<8x256xf32, #tpu.memory_space<vmem>>, vector<8x256xf32>,
    } else {
    }
    %c0 = arith.constant 0 : index
    %c0_1 = arith.constant 0 : index
    %3 = vector.load %arg2[%c0, %c0_1] : memref<8x256xf32, #tpu.memory_space<vmem>>, vector<8x256xf32>
    %c0_2 = arith.constant 0 : index
    %c0_3 = arith.constant 0 : index
    %4 = vector.load %arg3[%c0_2, %c0_3] : memref<8x256xf32, #tpu.memory_space<vmem>>, vector<8x256xf32>
    %cst = arith.constant 9.99999997E-7 : f32
    %5 = vector.broadcast %cst : f32 to vector<8x256xf32>
    %6 = arith.maximumf %4, %5 : vector<8x256xf32>
    %7 = math.log %3 : vector<8x256xf32>
    %cst_4 = arith.constant -1.000000e+02 : f32
    %8 = vector.broadcast %cst_4 : f32 to vector<8x256xf32>
    %9 = arith.maximumf %7, %8 : vector<8x256xf32>
    %cst_5 = arith.constant 1.000000e+00 : f32
    %10 = vector.broadcast %cst_5 : f32 to vector<8x256xf32>
    %11 = arith.subf %10, %3 : vector<8x256xf32>
    %12 = math.log %11 : vector<8x256xf32>
    %cst_6 = arith.constant -1.000000e+02 : f32
    %13 = vector.broadcast %cst_6 : f32 to vector<8x256xf32>
    %14 = arith.maximumf %12, %13 : vector<8x256xf32>
    %15 = arith.subf %9, %14 : vector<8x256xf32>
    %16 = arith.mulf %6, %15 : vector<8x256xf32>
    %17 = arith.addf %14, %16 : vector<8x256xf32>
    %cst_7 = arith.constant 0.000000e+00 : f32
    %18 = vector.broadcast %cst_7 : f32 to vector<8x256xf32>
    %19 = arith.subf %18, %17 : vector<8x256xf32>
    %c0_8 = arith.constant 0 : index
    %c0_9 = arith.constant 0 : index
    %20 = vector.load %arg11[%c0_8, %c0_9] : memref<8x256xf32, #tpu.memory_space<vmem>>, vector<8x256xf32>
    %21 = vector.shape_cast %19 : vector<8x256xf32> to vector<1x8x256xf32>
    %cst_10 = arith.constant dense<0.000000e+00> : vector<8x256xf32>
    %22 = vector.multi_reduction <add>, %21, %cst_10 [0] : vector<1x8x256xf32> to vector<8x256xf32>
    %23 = arith.addf %20, %22 : vector<8x256xf32>
    %c0_11 = arith.constant 0 : index
    %c0_12 = arith.constant 0 : index
    %24 = vector.load %arg11[%c0_11, %c0_12] : memref<8x256xf32, #tpu.memory_space<vmem>>, vector<8x256xf32>
    tpu.vector_store %arg11[%c0_11, %c0_12], %23 {strides = array<i32>} : memref<8x256xf32, #tpu.memory_space<vmem>>, vector<8x256xf32>,
    %c0_i32_13 = arith.constant 0 : i32
    %25 = arith.cmpi eq, %arg1, %c0_i32_13 : i32
    %26 = arith.extui %25 : i1 to i32
    %c0_i32_14 = arith.constant 0 : i32
    %27 = arith.cmpi ne, %26, %c0_i32_14 : i32
    scf.if %27 {
      %c0_15 = arith.constant 0 : index
      %c0_16 = arith.constant 0 : index
      %28 = vector.load %arg11[%c0_15, %c0_16] : memref<8x256xf32, #tpu.memory_space<vmem>>, vector<8x256xf32>
      %29 = vector.shape_cast %28 : vector<8x256xf32> to vector<1x8x256xf32>
      %cst_17 = arith.constant dense<0.000000e+00> : vector<1xf32>
      %30 = vector.multi_reduction <add>, %29, %cst_17 [1, 2] : vector<1x8x256xf32> to vector<1xf32>
      %31 = vector.shape_cast %30 : vector<1xf32> to vector<1x1x1xf32>
      %32 = vector.extract %31[0, 0, 0] : f32 from vector<1x1x1xf32>
      %cst_18 = arith.constant 4.8828125E-4 : f32
      %33 = arith.mulf %32, %cst_18 : f32
      %c0_19 = arith.constant 0 : index
      %c0_20 = arith.constant 0 : index
      %34 = vector.load %arg4[%c0_19, %c0_20] : memref<2x32xf32, #tpu.memory_space<vmem>>, vector<2x32xf32>
      %c0_21 = arith.constant 0 : index
      %c0_22 = arith.constant 0 : index
      %35 = vector.load %arg5[%c0_21, %c0_22] : memref<2x32xf32, #tpu.memory_space<vmem>>, vector<2x32xf32>
      %36 = arith.subf %34, %35 : vector<2x32xf32>
      %c0_23 = arith.constant 0 : index
      %c0_24 = arith.constant 0 : index
      %37 = vector.load %arg6[%c0_23, %c0_24] : memref<2x32xf32, #tpu.memory_space<vmem>>, vector<2x32xf32>
      %c0_25 = arith.constant 0 : index
      %c0_26 = arith.constant 0 : index
      %38 = vector.load %arg7[%c0_25, %c0_26] : memref<2x32xf32, #tpu.memory_space<vmem>>, vector<2x32xf32>
      %cst_27 = arith.constant -5.000000e-01 : f32
      %39 = vector.broadcast %cst_27 : f32 to vector<2x32xf32>
      %40 = arith.mulf %39, %38 : vector<2x32xf32>
      %41 = math.exp %40 : vector<2x32xf32>
      %cst_28 = arith.constant 5.000000e-01 : f32
      %42 = vector.broadcast %cst_28 : f32 to vector<2x32xf32>
      %43 = arith.mulf %42, %36 : vector<2x32xf32>
      %44 = arith.mulf %43, %36 : vector<2x32xf32>
      %cst_29 = arith.constant 0.918938517 : f32
      %45 = vector.broadcast %cst_29 : f32 to vector<2x32xf32>
      %46 = arith.addf %44, %45 : vector<2x32xf32>
      %47 = arith.subf %34, %37 : vector<2x32xf32>
      %48 = arith.mulf %47, %41 : vector<2x32xf32>
      %49 = arith.mulf %48, %48 : vector<2x32xf32>
      %cst_30 = arith.constant -5.000000e-01 : f32
      %50 = vector.broadcast %cst_30 : f32 to vector<2x32xf32>
      %51 = arith.mulf %50, %49 : vector<2x32xf32>
      %cst_31 = arith.constant 5.000000e-01 : f32
      %52 = vector.broadcast %cst_31 : f32 to vector<2x32xf32>
      %53 = arith.mulf %52, %38 : vector<2x32xf32>
      %54 = arith.subf %51, %53 : vector<2x32xf32>
      %cst_32 = arith.constant 0.918938517 : f32
      %55 = vector.broadcast %cst_32 : f32 to vector<2x32xf32>
      %56 = arith.subf %54, %55 : vector<2x32xf32>
      %57 = arith.addf %46, %56 : vector<2x32xf32>
      %58 = vector.shape_cast %57 : vector<2x32xf32> to vector<1x2x32xf32>
      %cst_33 = arith.constant dense<0.000000e+00> : vector<1xf32>
      %59 = vector.multi_reduction <add>, %58, %cst_33 [1, 2] : vector<1x2x32xf32> to vector<1xf32>
      %60 = vector.shape_cast %59 : vector<1xf32> to vector<1x1x1xf32>
      %61 = vector.extract %60[0, 0, 0] : f32 from vector<1x1x1xf32>
      %cst_34 = arith.constant 1.562500e-02 : f32
      %62 = arith.mulf %61, %cst_34 : f32
      %c0_35 = arith.constant 0 : index
      %c0_36 = arith.constant 0 : index
      %63 = vector.load %arg8[%c0_35, %c0_36] : memref<2x32xf32, #tpu.memory_space<vmem>>, vector<2x32xf32>
      %c0_37 = arith.constant 0 : index
      %c0_38 = arith.constant 0 : index
      %64 = vector.load %arg9[%c0_37, %c0_38] : memref<2x32xf32, #tpu.memory_space<vmem>>, vector<2x32xf32>
      %cst_39 = arith.constant 1.000000e+00 : f32
      %65 = vector.broadcast %cst_39 : f32 to vector<2x32xf32>
      %66 = arith.addf %65, %64 : vector<2x32xf32>
      %67 = arith.mulf %63, %63 : vector<2x32xf32>
      %68 = arith.subf %66, %67 : vector<2x32xf32>
      %69 = math.exp %64 : vector<2x32xf32>
      %70 = arith.subf %68, %69 : vector<2x32xf32>
      %71 = vector.shape_cast %70 : vector<2x32xf32> to vector<1x2x32xf32>
      %cst_40 = arith.constant dense<0.000000e+00> : vector<1xf32>
      %72 = vector.multi_reduction <add>, %71, %cst_40 [1, 2] : vector<1x2x32xf32> to vector<1xf32>
      %73 = vector.shape_cast %72 : vector<1xf32> to vector<1x1x1xf32>
      %74 = vector.extract %73[0, 0, 0] : f32 from vector<1x1x1xf32>
      %cst_41 = arith.constant 1.562500e-02 : f32
      %75 = arith.mulf %74, %cst_41 : f32
      %cst_42 = arith.constant -5.000000e-01 : f32
      %76 = arith.mulf %cst_42, %75 : f32
      %77 = arith.addf %62, %76 : f32
      %cst_43 = arith.constant 5.000000e-01 : f32
      %78 = arith.mulf %cst_43, %77 : f32
      %c0_i32_44 = arith.constant 0 : i32
      %79 = arith.cmpi eq, %arg0, %c0_i32_44 : i32
      %cst_45 = arith.constant 0.000000e+00 : f32
      %80 = arith.select %79, %78, %cst_45 : f32
      %81 = arith.addf %33, %80 : f32
      %82 = vector.broadcast %81 : f32 to vector<1x8x128xf32>
      %c0_46 = arith.constant 0 : index
      %c0_47 = arith.constant 0 : index
      %c0_48 = arith.constant 0 : index
      %83 = vector.load %arg10[%c0_46, %c0_47, %c0_48] : memref<1x8x128xf32, #tpu.memory_space<vmem>>, vector<1x8x128xf32>
      tpu.vector_store %arg10[%c0_46, %c0_47, %c0_48], %82 {strides = array<i32>} : memref<1x8x128xf32, #tpu.memory_space<vmem>>, vector<1x8x128xf32>,
    } else {
    }
    return
  }
  func.func @transform_0(%arg0: i32, %arg1: i32) -> (i32, i32) {
    %c1_i32 = arith.constant 1 : i32
    %0 = arith.muli %arg0, %c1_i32 : i32
    %1 = arith.addi %0, %arg1 : i32
    %c0_i32 = arith.constant 0 : i32
    %c0_i32_0 = arith.constant 0 : i32
    return %1, %c0_i32 : i32, i32
  }
  func.func @transform_1(%arg0: i32, %arg1: i32) -> (i32, i32) {
    %c1_i32 = arith.constant 1 : i32
    %0 = arith.muli %arg0, %c1_i32 : i32
    %1 = arith.addi %0, %arg1 : i32
    %c0_i32 = arith.constant 0 : i32
    %c0_i32_0 = arith.constant 0 : i32
    return %1, %c0_i32 : i32, i32
  }
  func.func @transform_2(%arg0: i32, %arg1: i32) -> (i32, i32) {
    %c0_i32 = arith.constant 0 : i32
    %c0_i32_0 = arith.constant 0 : i32
    %c0_i32_1 = arith.constant 0 : i32
    return %c0_i32, %c0_i32_0 : i32, i32
  }
  func.func @transform_3(%arg0: i32, %arg1: i32) -> (i32, i32) {
    %c0_i32 = arith.constant 0 : i32
    %c0_i32_0 = arith.constant 0 : i32
    %c0_i32_1 = arith.constant 0 : i32
    return %c0_i32, %c0_i32_0 : i32, i32
  }
  func.func @transform_4(%arg0: i32, %arg1: i32) -> (i32, i32) {
    %c0_i32 = arith.constant 0 : i32
    %c0_i32_0 = arith.constant 0 : i32
    %c0_i32_1 = arith.constant 0 : i32
    return %c0_i32, %c0_i32_0 : i32, i32
  }
  func.func @transform_5(%arg0: i32, %arg1: i32) -> (i32, i32) {
    %c0_i32 = arith.constant 0 : i32
    %c0_i32_0 = arith.constant 0 : i32
    %c0_i32_1 = arith.constant 0 : i32
    return %c0_i32, %c0_i32_0 : i32, i32
  }
  func.func @transform_6(%arg0: i32, %arg1: i32) -> (i32, i32) {
    %c0_i32 = arith.constant 0 : i32
    %c0_i32_0 = arith.constant 0 : i32
    %c0_i32_1 = arith.constant 0 : i32
    return %c0_i32, %c0_i32_0 : i32, i32
  }
  func.func @transform_7(%arg0: i32, %arg1: i32) -> (i32, i32) {
    %c0_i32 = arith.constant 0 : i32
    %c0_i32_0 = arith.constant 0 : i32
    %c0_i32_1 = arith.constant 0 : i32
    return %c0_i32, %c0_i32_0 : i32, i32
  }
  func.func @transform_8(%arg0: i32, %arg1: i32) -> (i32, i32, i32) {
    %c0_i32 = arith.constant 0 : i32
    %c0_i32_0 = arith.constant 0 : i32
    %c0_i32_1 = arith.constant 0 : i32
    return %arg0, %c0_i32, %c0_i32_0 : i32, i32, i32
  }
}

</mosaic_0001>

<bundles_post_ra>
// kernel: tpu_custom_call.1
= control target key start
LH: loop header
LB: loop body
LE: loop exit
PB: predicated region body
PF: predicated region fallthrough
CT: control target
= control target key end

     0   :  { %13 = vsyncpa [#allocation4], 0  ;;  %s361_s0 = inlined_call_operand.hbm [shape: f32[8,256], index: 0, kind: input, shape index: {}]   ;;  %s362_s1 = inlined_call_operand.hbm [shape: f32[8,256], index: 1, kind: input, shape index: {}]   ;;  %s363_s2 = inlined_call_operand.vmem [shape: f32[2,32], index: 2, kind: input, shape index: {}]   ;;  %s364_s3 = inlined_call_operand.vmem [shape: f32[2,32], index: 3, kind: input, shape index: {}]   ;;  %s365_s4 = inlined_call_operand.vmem [shape: f32[2,32], index: 4, kind: input, shape index: {}]   ;;  %s366_s5 = inlined_call_operand.vmem [shape: f32[2,32], index: 5, kind: input, shape index: {}]   ;;  %s367_s6 = inlined_call_operand.vmem [shape: f32[2,32], index: 6, kind: input, shape index: {}]   ;;  %s368_s7 = inlined_call_operand.vmem [shape: f32[2,32], index: 7, kind: input, shape index: {}]   ;;  %s369_s8 = inlined_call_operand.hbm [shape: f32[1,8,128], index: 8, kind: output, shape index: {}]  }
   0x1   :  { %14 = vsyncpa [#allocation7], 0 }
   0x2   :  { %15 = vsyncpa [#allocation5], 0  ;;  %s284_s27 = smov [#allocation3]   ;;  %s285_s29 = smov [#allocation6]  }
   0x3   :  { %s26_s28 = sshll.u32 %s284_s27, 4  ;;  %s40_s30 = sshll.u32 %s285_s29, 4  ;;  %s27_s28 = int_to_ptr.vmem [resolvable:$true] %s26_s28  ;;  %s41_s30 = int_to_ptr.vmem [resolvable:$true] %s40_s30 }
   0x4   :  { %s226_s9 = scalar_lea.vmem %s27_s28, 256  ;;  %p231_p1 = scmp.lt.s32.totalorder %s27_s28, %s27_s28 }
   0x5   :  { %p227_p0 = scmp.ne.s32.totalorder %s27_s28, %s226_s9  ;;  %p232_p2 = scmp.lt.s32.totalorder %s226_s9, %s226_s9 }
   0x7   :  { %p233_p3 = por %p232_p2, %p231_p1 }
   0x9   :  { %p234_p4 = pnand %p233_p3, %p227_p0 }
   0xb   :  { %237 = shalt.err (!%p234_p4)
}
   0xc   :  { %29 = dma.hbm_to_vmem [thread:$0]  %s361_s0, 256, %s27_s28, [#allocation4]  }
   0xd   :  { %s246_s12 = scalar_lea.vmem %s41_s30, 256  ;;  %p251_p6 = scmp.lt.s32.totalorder %s41_s30, %s41_s30 }
   0xe   :  { %p247_p5 = scmp.ne.s32.totalorder %s41_s30, %s246_s12  ;;  %p252_p7 = scmp.lt.s32.totalorder %s246_s12, %s246_s12 }
  0x10   :  { %p253_p8 = por %p252_p7, %p251_p6 }
  0x12   :  { %p254_p9 = pnand %p253_p8, %p247_p5 }
  0x14   :  { %257 = shalt.err (!%p254_p9)
}
  0x15   :  { %43 = dma.hbm_to_vmem [thread:$0]  %s362_s1, 256, %s41_s30, [#allocation7]  }
  0x16   :  { %278 = dma.done.wait [#allocation4], 256  }
  0x17   :  { %279 = vsyncadd [#allocation4], 4294967040 }
  0x18   :  { %280 = dma.done.wait [#allocation7], 256  }
  0x19   :  { %281 = vsyncadd [#allocation7], 4294967040  ;;  %v154_v0 = vld [vmem:[%s368_s7] sm:$0x3]  ;;  %v71_v3 = vld [vmem:[#allocation3 + $0x8] sm:$0xff]  ;;  %vm141_vm0 = vcmask 254976  }
  0x1a   :  { %v70_v1 = vld [vmem:[#allocation3] sm:$0xff]  ;;  %v158_v2 = vmul.f32 1.442695, %v154_v0  ;;  %v83_v5 = vsub.f32 1.0, %v71_v3  ;;  %v155_v10 = vadd.f32 1.0, %v154_v0  ;;  %v72_v23 = vld [vmem:[#allocation6] sm:$0xff] }
  0x1b   :  { %206 = vlog2.f32 %v70_v1  ;;  %v82_v4 = vsub.f32 1.0, %v70_v1  ;;  %v126_v6 = vld [vmem:[%s366_s5] sm:$0x3]  ;;  %v73_v26 = vld [vmem:[#allocation6 + $0x8] sm:$0xff]  ;;  %v74_v33 = vmax.f32 %v72_v23, 1e-06 }
  0x1c   :  { %208 = vlog2.f32 %v71_v3  ;;  %v127_v7 = vmul.f32 -0.5, %v126_v6  ;;  %v153_v8 = vld [vmem:[%s367_s6] sm:$0x3]  ;;  %v75_v35 = vmax.f32 %v73_v26, 1e-06  ;;  %v137_v46 = vmul.f32 0.5, %v126_v6 }
  0x1d   :  { %210 = vpow2.f32 %v158_v2  ;;  %v156_v11 = vmul.f32 %v153_v8, %v153_v8  ;;  %v123_v14 = vld [vmem:[%s364_s3] sm:$0x3]  ;;  %s286_s28 = smov [#allocation8]  }
  0x1e   :  { %212 = vlog2.f32 %v82_v4  ;;  %v128_v9 = vmul.f32 1.442695, %v127_v7  ;;  %v122_v19 = vld [vmem:[%s363_s2] sm:$0x3]  ;;  %s186_s29 = sshll.u32 %s286_s28, 4  ;;  %s187_s29 = int_to_ptr.vmem [resolvable:$true] %s186_s29 }
  0x1f   :  { %214 = vlog2.f32 %v83_v5  ;;  %v157_v12 = vsub.f32 %v155_v10, %v156_v11  ;;  %v125_v20 = vld [vmem:[%s365_s4] sm:$0x3]  ;;  %v124_v24 = vsub.f32 %v122_v19, %v123_v14  ;;  %s258_s9 = scalar_lea.vmem %s187_s29, 128  ;;  %p263_p11 = scmp.lt.s32.totalorder %s187_s29, %s187_s29 }
  0x20   :  { %216 = vpow2.f32 %v128_v9  ;;  %v133_v32 = vsub.f32 %v122_v19, %v125_v20  ;;  %p259_p10 = scmp.ne.s32.totalorder %s187_s29, %s258_s9  ;;  %p264_p12 = scmp.lt.s32.totalorder %s258_s9, %s258_s9 }
  0x21   :  { %v130_v37 = vmul.f32 0.5, %v124_v24 }
  0x22   :  { %p265_p13 = por %p264_p12, %p263_p11 }
  0x23   :  { %v131_v44 = vmul.f32 %v130_v37, %v124_v24 }
  0x24   :  { %p266_p0 = pnand %p265_p13, %p259_p10 }
  0x25   :  { %v132_v52 = vadd.f32 0.9189385, %v131_v44 }
  0x28   :  { %v207_v13 = vpop.eup %206 }
  0x29   :  { %v209_v15 = vpop.eup %208  ;;  %v77_v16 = vmul.f32 0.6931472, %v207_v13 }
  0x2a   :  { %v211_v17 = vpop.eup %210  ;;  %v79_v18 = vmul.f32 0.6931472, %v209_v15 }
  0x2b   :  { %v213_v21 = vpop.eup %212  ;;  %v160_v22 = vsub.f32 %v157_v12, %v211_v17  ;;  %v80_v27 = vmax.f32 %v77_v16, -100.0 }
  0x2c   :  { %v215_v25 = vpop.eup %214  ;;  %v85_v28 = vmul.f32 0.6931472, %v213_v21  ;;  %v81_v30 = vmax.f32 %v79_v18, -100.0 }
  0x2d   :  { %v161_v29 = vsel %vm141_vm0, %v160_v22, 0.0  ;;  %v87_v31 = vmul.f32 0.6931472, %v215_v25  ;;  %v217_v38 = vpop.eup %216 }
  0x2e   :  { %162 = vadd.xlane.f32.xlu1 %v161_v29  ;;  %v88_v34 = vmax.f32 %v85_v28, -100.0  ;;  %v134_v41 = vmul.f32 %v217_v38, %v133_v32 }
  0x2f   :  { %v89_v36 = vmax.f32 %v87_v31, -100.0 }
  0x30   :  { %v90_v39 = vsub.f32 %v80_v27, %v88_v34  ;;  %v135_v45 = vmul.f32 %v134_v41, %v134_v41 }
  0x31   :  { %v91_v40 = vsub.f32 %v81_v30, %v89_v36 }
  0x32   :  { %v92_v42 = vmul.f32 %v90_v39, %v74_v33  ;;  %v136_v49 = vmul.f32 -0.5, %v135_v45 }
  0x33   :  { %v93_v43 = vmul.f32 %v91_v40, %v75_v35 }
  0x34   :  { %v94_v47 = vadd.f32 %v92_v42, %v88_v34  ;;  %v138_v53 = vsub.f32 %v136_v49, %v137_v46 }
  0x35   :  { %v95_v48 = vadd.f32 %v93_v43, %v89_v36 }
  0x36   :  { %v96_v50 = vsub.f32 0.0, %v94_v47  ;;  %v196_v55 = vadd.f32 -0.9189385, %v138_v53 }
  0x37   :  { %v97_v51 = vsub.f32 0.0, %v95_v48 }
  0x38   :  { %v140_v56 = vadd.f32 %v196_v55, %v132_v52 }
  0x39   :  { %v111_v54 = vadd.f32 %v97_v51, %v96_v50 }
  0x3a   :  { %v142_v57 = vsel %vm141_vm0, %v140_v56, 0.0 }
  0x3b   :  { %112 = vadd.xlane.f32.xlu0 %v111_v54 }
  0x3f   :  { %143 = vadd.xlane.f32.xlu0 %v142_v57 }
  0xb7   :  { %v163_v58 = vpop.xlane.xlu1 %162 }
  0xb8   :  { %v164_v59 = vrot.slane %v163_v58, 4 }
  0xba   :  { %v165_v60 = vadd.f32 %v164_v59, %v163_v58 }
  0xbc   :  { %v166_v0 = vrot.slane %v165_v60, 2 }
  0xbe   :  { %v167_v6 = vadd.f32 %v166_v0, %v165_v60 }
  0xc0   :  { %v168_v11 = vrot.slane %v167_v6, 1 }
  0xc2   :  { %v169_v14 = vadd.f32 %v168_v11, %v167_v6 }
  0xc4   :  { %v113_v61 = vpop.xlane.xlu0 %112 }
  0xc5   :  { %v114_v62 = vrot.slane %v113_v61, 4 }
  0xc7   :  { %v115_v63 = vadd.f32 %v114_v62, %v113_v61 }
  0xc8   :  { %v144_v1 = vpop.xlane.xlu0 %143 }
  0xc9   :  { %v116_v2 = vrot.slane %v115_v63, 2  ;;  %v145_v3 = vrot.slane %v144_v1, 4 }
  0xcb   :  { %v146_v4 = vadd.f32 %v145_v3, %v144_v1  ;;  %v117_v5 = vadd.f32 %v116_v2, %v115_v63 }
  0xcd   :  { %v147_v7 = vrot.slane %v146_v4, 2  ;;  %v118_v8 = vrot.slane %v117_v5, 1 }
  0xcf   :  { %v148_v9 = vadd.f32 %v147_v7, %v146_v4  ;;  %v119_v10 = vadd.f32 %v118_v8, %v117_v5 }
  0xd1   :  { %197 = vpush %v119_v10  ;;  %v149_v12 = vrot.slane %v148_v9, 1 }
  0xd3   :  { %v150_v13 = vadd.f32 %v149_v12, %v148_v9 }
  0xd5   :  { %199 = vpush %v150_v13 }
  0xd6   :  { %201 = vpush %v169_v14 }
 0x102   :  { %s198_s2 = spop %197 }
 0x103   :  { %s121_s26 = smul.f32 0.00048828125, %s198_s2 }
 0x106   :  { %s200_s3 = spop %199 }
 0x107   :  { %s202_s4 = spop %201  ;;  %s152_s23 = smul.f32 0.015625, %s200_s3 }
 0x108   :  { %s171_s22 = smul.f32 0.015625, %s202_s4 }
 0x10a   :  { %s172_s24 = smul.f32 -0.5, %s171_s22 }
 0x10c   :  { %s173_s25 = sadd.f32 %s172_s24, %s152_s23 }
 0x10e   :  { %s174_s27 = smul.f32 0.5, %s173_s25 }
 0x110   :  { %s177_s30 = sadd.f32 %s174_s27, %s121_s26 }
 0x112   :  { %v178_v15 = vstv %s177_s30 }
 0x113   :  { %179 = vst [vmem:[#allocation8] sm:$0xff] %v178_v15 }
 0x114   :  { %269 = shalt.err (!%p266_p0)
}
 0x115   :  { %189 = dma.vmem_to_hbm [thread:$0]  %s187_s29, 128, %s369_s8, [#allocation5]  }
 0x116   :  { %282 = dma.done.wait [#allocation5], 128  }
 0x117   :  { %283 = vsyncadd [#allocation5], 4294967168 }
 0x118   :  { %193 = vsyncpa [#allocation4], 1 }
 0x119   :  { %194 = vsyncpa [#allocation7], 1 }
 0x11a   :  { %195 = vsyncpa [#allocation5], 1 }

</bundles_post_ra>
